<compile_context>
chip_gen: v6e
topology: v6e:2x2x1
jax: 0.10.0
libtpu: 0.0.40
codegen_flags: <defaults>
</compile_context>

<pallas_src>
import functools

import jax
import jax.numpy as jnp
from jax.experimental import pallas as pl
from jax.experimental.pallas import tpu as pltpu

MARGIN = 1.0  # module __init__ arg; deterministic in-script value


def _triplet_loss_kernel(a_ref, p_ref, n_ref, out_ref, *, margin, batch_size,
                         tiles_per_core, needs_mask):
    """One (TB, D) batch tile: accumulate a per-core partial loss sum."""
    c = pl.program_id(0)   # core-parallel axis
    i = pl.program_id(1)   # sequential reduction axis (per core)

    @pl.when(i == 0)
    def _():
        out_ref[...] = jnp.zeros_like(out_ref)

    a = a_ref[...].astype(jnp.float32)
    p = p_ref[...].astype(jnp.float32)
    n = n_ref[...].astype(jnp.float32)

    # dist_pos - dist_neg == sum((n - p) * ((a - p) + (a - n)), axis=1)
    # -> one cross-lane reduce per tile instead of two.
    delta = jnp.sum((n - p) * ((a - p) + (a - n)), axis=1, keepdims=True)  # (TB, 1)
    losses = jnp.maximum(delta + margin, 0.0)                              # relu

    if needs_mask:
        # Mask rows past the real batch (ragged tail and/or padded grid steps).
        # Keep this a select (jnp.where) so NaN/Inf in padded data can't leak.
        tb = a_ref.shape[0]
        global_tile = c * tiles_per_core + i
        row = jax.lax.broadcasted_iota(jnp.int32, (tb, 1), 0) + global_tile * tb
        losses = jnp.where(row < batch_size, losses, 0.0)

    # Lane-dense (1, 128) per-core accumulator; scalar partial sum broadcast
    # across lanes (unmasked vst, no sub-lane-width stores).
    out_ref[...] += jnp.sum(losses)


def _vmem_limit_bytes():
    """~3/4 of physical VMEM: ~96 MiB on v5e/v6e (128 MiB), ~48 MiB on v7x (64 MiB)."""
    try:
        cap = int(pltpu.get_tpu_info().vmem_capacity_bytes)
    except Exception:
        cap = 64 * 1024 * 1024  # conservative fallback, safe on every generation
    return (cap * 3) // 4


def _pick_batch_tile(batch, dim, itemsize, vmem_limit):
    """Largest sublane-aligned batch tile fitting the generation's VMEM budget.

    Accounts for: 3 inputs x 2 pipeline buffers in the input dtype, the
    lane-padded tile width ceil(D/128)*128, and ~5 live (TB, Dp) f32
    temporaries for the in-kernel upcast/arithmetic.
    """
    padded_d = ((dim + 127) // 128) * 128
    bytes_per_row = padded_d * (6 * itemsize + 5 * 4)
    budget = max(vmem_limit - 2 * 1024 * 1024, 4 * 1024 * 1024)
    tb = int(budget // bytes_per_row)
    sub = max(8, 32 // itemsize)      # native sublane tile: 8 f32 / 16 bf16 / 32 i8
    if tb >= batch:
        return batch                  # single full-extent block
    return max(sub, (tb // sub) * sub)


def triplet_loss(anchor, positive, negative, margin=MARGIN, size_average=True,
                 batch_tile=None, num_cores=2):
    """Pallas wrapper. anchor/positive/negative: (B, D) arrays (f32 or bf16)."""
    assert anchor.shape == positive.shape == negative.shape
    assert anchor.dtype == positive.dtype == negative.dtype
    B, D = anchor.shape
    itemsize = jnp.dtype(anchor.dtype).itemsize
    sub = max(8, 32 // itemsize)

    vmem_limit = _vmem_limit_bytes()
    tb = batch_tile if batch_tile is not None else _pick_batch_tile(
        B, D, itemsize, vmem_limit)
    assert tb == B or tb % sub == 0, (
        f"batch tile must be a multiple of {sub} (dtype sublane tile) or == B")

    num_tiles = pl.cdiv(B, tb)
    num_cores = max(1, min(int(num_cores), int(num_tiles)))
    tiles_per_core = pl.cdiv(num_tiles, num_cores)
    # Static: does the grid cover more rows than B (ragged tail / padded steps)?
    needs_mask = (num_cores * tiles_per_core * tb != B)

    kernel = functools.partial(
        _triplet_loss_kernel,
        margin=float(margin),
        batch_size=B,
        tiles_per_core=int(tiles_per_core),
        needs_mask=needs_mask,
    )

    last_tile = int(num_tiles) - 1
    tpc = int(tiles_per_core)

    def in_map(c, i):
        # Clamp so grid steps past the last real tile re-read a valid block;
        # their rows are masked out in-kernel via the *nominal* tile index.
        return (jnp.minimum(c * tpc + i, last_tile), 0)

    in_spec = pl.BlockSpec((tb, D), in_map)

    out = pl.pallas_call(
        kernel,
        out_shape=jax.ShapeDtypeStruct((1, num_cores * 128), jnp.float32),
        grid=(num_cores, tpc),
        in_specs=[in_spec, in_spec, in_spec],
        out_specs=pl.BlockSpec((1, 128), lambda c, i: (0, c)),  # per-core accumulator
        compiler_params=pltpu.CompilerParams(
            dimension_semantics=("parallel", "arbitrary"),
            vmem_limit_bytes=int(vmem_limit),
        ),
    )(anchor, positive, negative)

    # Each per-core (1, 128) block holds its partial sum broadcast across lanes.
    partials = out.reshape(num_cores, 128)[:, 0]
    total = jnp.sum(partials)
    return total / jnp.float32(B) if size_average else total


def _reference(anchor, positive, negative, margin=MARGIN, size_average=True):
    a = anchor.astype(jnp.float32)
    p = positive.astype(jnp.float32)
    n = negative.astype(jnp.float32)
    dp = jnp.sum((a - p) ** 2, axis=1)
    dn = jnp.sum((a - n) ** 2, axis=1)
    losses = jax.nn.relu(dp - dn + margin)
    return jnp.mean(losses) if size_average else jnp.sum(losses)


if __name__ == "__main__":
    key = jax.random.PRNGKey(0)
    k_a, k_p, k_n = jax.random.split(key, 3)

    # 1) Small embedding batch (single tile, single core), f32, mean reduction.
    B, D = 8, 32
    anchor = jax.random.normal(k_a, (B, D), dtype=jnp.float32)
    positive = jax.random.normal(k_p, (B, D), dtype=jnp.float32)
    negative = jax.random.normal(k_n, (B, D), dtype=jnp.float32)

    loss = triplet_loss(anchor, positive, negative)
    jax.block_until_ready(loss)
    ref = _reference(anchor, positive, negative)
    assert jnp.allclose(loss, ref, rtol=1e-4, atol=1e-4), (loss, ref)

    # 2) Two-core grid with a ragged tail (B=20, TB=8 -> 3 real tiles split
    #    across 2 cores, masked tail + one fully-masked padded step), both
    #    mean and sum reductions.
    B2, D2 = 20, 32
    a2 = jax.random.normal(k_a, (B2, D2), dtype=jnp.float32)
    p2 = jax.random.normal(k_p, (B2, D2), dtype=jnp.float32)
    n2 = jax.random.normal(k_n, (B2, D2), dtype=jnp.float32)

    loss2 = triplet_loss(a2, p2, n2, batch_tile=8)
    jax.block_until_ready(loss2)
    ref2 = _reference(a2, p2, n2)
    assert jnp.allclose(loss2, ref2, rtol=1e-4, atol=1e-4), (loss2, ref2)

    loss2s = triplet_loss(a2, p2, n2, size_average=False, batch_tile=8)
    jax.block_until_ready(loss2s)
    ref2s = _reference(a2, p2, n2, size_average=False)
    assert jnp.allclose(loss2s, ref2s, rtol=1e-4, atol=1e-4), (loss2s, ref2s)

    # 3) Two-core grid, evenly divisible batch (mask specialized away).
    B4, D4 = 32, 64
    a4 = jax.random.normal(k_a, (B4, D4), dtype=jnp.float32)
    p4 = jax.random.normal(k_p, (B4, D4), dtype=jnp.float32)
    n4 = jax.random.normal(k_n, (B4, D4), dtype=jnp.float32)

    loss4 = triplet_loss(a4, p4, n4, batch_tile=8)
    jax.block_until_ready(loss4)
    ref4 = _reference(a4, p4, n4)
    assert jnp.allclose(loss4, ref4, rtol=1e-4, atol=1e-4), (loss4, ref4)

    # 4) bf16 input traffic (halves HBM bytes), f32 accumulation in-kernel.
    B3, D3 = 16, 128
    a3 = jax.random.normal(k_a, (B3, D3), dtype=jnp.bfloat16)
    p3 = jax.random.normal(k_p, (B3, D3), dtype=jnp.bfloat16)
    n3 = jax.random.normal(k_n, (B3, D3), dtype=jnp.bfloat16)

    loss3 = triplet_loss(a3, p3, n3)
    jax.block_until_ready(loss3)
    ref3 = _reference(a3, p3, n3)
    assert jnp.allclose(loss3, ref3, rtol=1e-2, atol=1e-2), (loss3, ref3)

    print("KERNEL_OK")
</pallas_src>

<mosaic_0001>
module attributes {stable_mosaic.version = 11 : i64} {
  func.func @_triplet_loss_kernel(%arg0: i32, %arg1: i32, %arg2: memref<8x32xf32, #tpu.memory_space<vmem>>, %arg3: memref<8x32xf32, #tpu.memory_space<vmem>>, %arg4: memref<8x32xf32, #tpu.memory_space<vmem>>, %arg5: memref<1x128xf32, #tpu.memory_space<vmem>>) attributes {dimension_semantics = [#tpu.dimension_semantics<parallel>, #tpu.dimension_semantics<arbitrary>], iteration_bounds = array<i64: 1, 1>, scalar_prefetch = 0 : i64, scratch_operands = 0 : i64, tpu.core_type = #tpu.core_type<tc>, window_params = [{transform_indices = @transform_0, window_bounds = array<i64: 8, 32>}, {transform_indices = @transform_1, window_bounds = array<i64: 8, 32>}, {transform_indices = @transform_2, window_bounds = array<i64: 8, 32>}, {transform_indices = @transform_3, window_bounds = array<i64: 1, 128>}]} {
    %c0_i32 = arith.constant 0 : i32
    %0 = arith.cmpi eq, %arg1, %c0_i32 : i32
    %1 = arith.extui %0 : i1 to i32
    %c0_i32_0 = arith.constant 0 : i32
    %2 = arith.cmpi ne, %1, %c0_i32_0 : i32
    scf.if %2 {
      %cst_13 = arith.constant 0.000000e+00 : f32
      %25 = vector.broadcast %cst_13 : f32 to vector<1x128xf32>
      %c0_14 = arith.constant 0 : index
      %c0_15 = arith.constant 0 : index
      %26 = vector.load %arg5[%c0_14, %c0_15] : memref<1x128xf32, #tpu.memory_space<vmem>>, vector<1x128xf32>
      tpu.vector_store %arg5[%c0_14, %c0_15], %25 {strides = array<i32>} : memref<1x128xf32, #tpu.memory_space<vmem>>, vector<1x128xf32>,
    } else {
    }
    %c0 = arith.constant 0 : index
    %c0_1 = arith.constant 0 : index
    %3 = vector.load %arg2[%c0, %c0_1] : memref<8x32xf32, #tpu.memory_space<vmem>>, vector<8x32xf32>
    %c0_2 = arith.constant 0 : index
    %c0_3 = arith.constant 0 : index
    %4 = vector.load %arg3[%c0_2, %c0_3] : memref<8x32xf32, #tpu.memory_space<vmem>>, vector<8x32xf32>
    %c0_4 = arith.constant 0 : index
    %c0_5 = arith.constant 0 : index
    %5 = vector.load %arg4[%c0_4, %c0_5] : memref<8x32xf32, #tpu.memory_space<vmem>>, vector<8x32xf32>
    %6 = arith.subf %5, %4 : vector<8x32xf32>
    %7 = arith.subf %3, %4 : vector<8x32xf32>
    %8 = arith.subf %3, %5 : vector<8x32xf32>
    %9 = arith.addf %7, %8 : vector<8x32xf32>
    %10 = arith.mulf %6, %9 : vector<8x32xf32>
    %cst = arith.constant dense<0.000000e+00> : vector<8xf32>
    %11 = vector.multi_reduction <add>, %10, %cst [1] : vector<8x32xf32> to vector<8xf32>
    %12 = vector.shape_cast %11 : vector<8xf32> to vector<8x1xf32>
    %cst_6 = arith.constant 1.000000e+00 : f32
    %13 = vector.broadcast %cst_6 : f32 to vector<8x1xf32>
    %14 = arith.addf %12, %13 : vector<8x1xf32>
    %cst_7 = arith.constant 0.000000e+00 : f32
    %15 = vector.broadcast %cst_7 : f32 to vector<8x1xf32>
    %16 = arith.maximumf %14, %15 : vector<8x1xf32>
    %c0_8 = arith.constant 0 : index
    %c0_9 = arith.constant 0 : index
    %17 = vector.load %arg5[%c0_8, %c0_9] : memref<1x128xf32, #tpu.memory_space<vmem>>, vector<1x128xf32>
    %18 = vector.shape_cast %16 : vector<8x1xf32> to vector<1x8x1xf32>
    %cst_10 = arith.constant dense<0.000000e+00> : vector<1xf32>
    %19 = vector.multi_reduction <add>, %18, %cst_10 [1, 2] : vector<1x8x1xf32> to vector<1xf32>
    %20 = vector.shape_cast %19 : vector<1xf32> to vector<1x1x1xf32>
    %21 = vector.extract %20[0, 0, 0] : f32 from vector<1x1x1xf32>
    %22 = vector.broadcast %21 : f32 to vector<1x128xf32>
    %23 = arith.addf %17, %22 : vector<1x128xf32>
    %c0_11 = arith.constant 0 : index
    %c0_12 = arith.constant 0 : index
    %24 = vector.load %arg5[%c0_11, %c0_12] : memref<1x128xf32, #tpu.memory_space<vmem>>, vector<1x128xf32>
    tpu.vector_store %arg5[%c0_11, %c0_12], %23 {strides = array<i32>} : memref<1x128xf32, #tpu.memory_space<vmem>>, vector<1x128xf32>,
    return
  }
  func.func @transform_0(%arg0: i32, %arg1: i32) -> (i32, i32) {
    %c1_i32 = arith.constant 1 : i32
    %0 = arith.muli %arg0, %c1_i32 : i32
    %1 = arith.addi %0, %arg1 : i32
    %c0_i32 = arith.constant 0 : i32
    %2 = arith.minsi %1, %c0_i32 : i32
    %c0_i32_0 = arith.constant 0 : i32
    %c0_i32_1 = arith.constant 0 : i32
    return %2, %c0_i32_0 : i32, i32
  }
  func.func @transform_1(%arg0: i32, %arg1: i32) -> (i32, i32) {
    %c1_i32 = arith.constant 1 : i32
    %0 = arith.muli %arg0, %c1_i32 : i32
    %1 = arith.addi %0, %arg1 : i32
    %c0_i32 = arith.constant 0 : i32
    %2 = arith.minsi %1, %c0_i32 : i32
    %c0_i32_0 = arith.constant 0 : i32
    %c0_i32_1 = arith.constant 0 : i32
    return %2, %c0_i32_0 : i32, i32
  }
  func.func @transform_2(%arg0: i32, %arg1: i32) -> (i32, i32) {
    %c1_i32 = arith.constant 1 : i32
    %0 = arith.muli %arg0, %c1_i32 : i32
    %1 = arith.addi %0, %arg1 : i32
    %c0_i32 = arith.constant 0 : i32
    %2 = arith.minsi %1, %c0_i32 : i32
    %c0_i32_0 = arith.constant 0 : i32
    %c0_i32_1 = arith.constant 0 : i32
    return %2, %c0_i32_0 : i32, i32
  }
  func.func @transform_3(%arg0: i32, %arg1: i32) -> (i32, i32) {
    %c0_i32 = arith.constant 0 : i32
    %c0_i32_0 = arith.constant 0 : i32
    return %c0_i32, %arg0 : i32, i32
  }
}

</mosaic_0001>

<bundles_post_ra>
// kernel: tpu_custom_call.1
= control target key start
LH: loop header
LB: loop body
LE: loop exit
PB: predicated region body
PF: predicated region fallthrough
CT: control target
= control target key end

     0   :  { %8 = vsyncpa [#allocation3], 0  ;;  %s260_s0 = inlined_call_operand.hbm [shape: f32[8,32], index: 0, kind: input, shape index: {}]   ;;  %s261_s1 = inlined_call_operand.hbm [shape: f32[8,32], index: 1, kind: input, shape index: {}]   ;;  %s262_s2 = inlined_call_operand.hbm [shape: f32[8,32], index: 2, kind: input, shape index: {}]   ;;  %s263_s3 = inlined_call_operand.hbm [shape: f32[1,128], index: 3, kind: output, shape index: {}]  }
   0x1   :  { %9 = vsyncpa [#allocation6], 0 }
   0x2   :  { %10 = vsyncpa [#allocation4], 0  ;;  %s223_s12 = smov [#allocation5]   ;;  %s224_s14 = smov [#allocation2]  }
   0x3   :  { %s37_s13 = sshll.u32 %s223_s12, 4  ;;  %s22_s15 = sshll.u32 %s224_s14, 4  ;;  %s38_s13 = int_to_ptr.vmem [resolvable:$true] %s37_s13  ;;  %s23_s15 = int_to_ptr.vmem [resolvable:$true] %s22_s15 }
   0x4   :  { %s145_s16 = scalar_lea.vmem %s38_s13, 128  ;;  %p150_p1 = scmp.lt.s32.totalorder %s38_s13, %s38_s13 }
   0x5   :  { %p146_p0 = scmp.ne.s32.totalorder %s38_s13, %s145_s16  ;;  %p151_p2 = scmp.lt.s32.totalorder %s145_s16, %s145_s16 }
   0x7   :  { %p152_p3 = por %p151_p2, %p150_p1 }
   0x9   :  { %p153_p4 = pnand %p152_p3, %p146_p0 }
   0xb   :  { %156 = shalt.err (!%p153_p4)
}
   0xc   :  { %40 = dma.hbm_to_vmem [thread:$0]  %s261_s1, 128, %s38_s13, [#allocation6]  }
   0xd   :  { %s165_s19 = scalar_lea.vmem %s23_s15, 128  ;;  %p170_p6 = scmp.lt.s32.totalorder %s23_s15, %s23_s15 }
   0xe   :  { %p166_p5 = scmp.ne.s32.totalorder %s23_s15, %s165_s19  ;;  %p171_p7 = scmp.lt.s32.totalorder %s165_s19, %s165_s19 }
  0x10   :  { %p172_p8 = por %p171_p7, %p170_p6 }
  0x12   :  { %p173_p9 = pnand %p172_p8, %p166_p5 }
  0x14   :  { %176 = shalt.err (!%p173_p9)
}
  0x15   :  { %25 = dma.hbm_to_vmem [thread:$0]  %s260_s0, 128, %s23_s15, [#allocation3]  }
  0x16   :  { %s225_s22 = smov [#allocation7]  }
  0x17   :  { %s52_s23 = sshll.u32 %s225_s22, 4  ;;  %s53_s23 = int_to_ptr.vmem [resolvable:$true] %s52_s23 }
  0x18   :  { %s185_s24 = scalar_lea.vmem %s53_s23, 128  ;;  %p190_p11 = scmp.lt.s32.totalorder %s53_s23, %s53_s23 }
  0x19   :  { %p186_p10 = scmp.ne.s32.totalorder %s53_s23, %s185_s24  ;;  %p191_p12 = scmp.lt.s32.totalorder %s185_s24, %s185_s24 }
  0x1b   :  { %p192_p13 = por %p191_p12, %p190_p11 }
  0x1d   :  { %p193_p0 = pnand %p192_p13, %p186_p10 }
  0x1f   :  { %196 = shalt.err (!%p193_p0)
}
  0x20   :  { %55 = dma.hbm_to_vmem [thread:$0]  %s262_s2, 128, %s53_s23, [#allocation6]  }
  0x21   :  { %217 = dma.done.wait [#allocation3], 128  }
  0x22   :  { %218 = vsyncadd [#allocation3], 4294967168 }
  0x23   :  { %219 = dma.done.wait [#allocation6], 256  }
  0x24   :  { %220 = vsyncadd [#allocation6], 4294967040  ;;  %v226_v0 = vmov 0.0   ;;  %v79_v1 = vld [vmem:[#allocation2] sm:$0xff]  ;;  %v80_v2 = vld [vmem:[#allocation5] sm:$0xff]  ;;  %vm87_vm0 = vcmask 261120  }
  0x25   :  { %78 = vst [vmem:[#allocation8] sm:$0x1] %v226_v0  ;;  %v81_v3 = vld [vmem:[#allocation7] sm:$0xff]  ;;  %v83_v5 = vsub.f32 %v79_v1, %v80_v2  ;;  %vm94_vm1 = vcmask 7168   ;;  %s227_s0 = smov [#allocation8]  }
  0x26   :  { %v82_v4 = vsub.f32 %v81_v3, %v80_v2  ;;  %v84_v6 = vsub.f32 %v79_v1, %v81_v3  ;;  %s114_s2 = sshll.u32 %s227_s0, 4  ;;  %s115_s2 = int_to_ptr.vmem [resolvable:$true] %s114_s2 }
  0x27   :  { %s197_s27 = scalar_lea.vmem %s115_s2, 16  ;;  %s201_s28 = scalar_lea.vmem %s115_s2, 32 }
  0x28   :  { %v85_v7 = vadd.f32 %v84_v6, %v83_v5  ;;  %p198_p1 = scmp.ne.s32.totalorder %s115_s2, %s197_s27  ;;  %p202_p2 = scmp.lt.s32.totalorder %s115_s2, %s115_s2 }
  0x29   :  { %p203_p3 = scmp.lt.s32.totalorder %s201_s28, %s197_s27 }
  0x2a   :  { %v86_v8 = vmul.f32 %v85_v7, %v82_v4 }
  0x2b   :  { %p204_p4 = por %p203_p3, %p202_p2 }
  0x2c   :  { %v88_v9 = vsel %vm87_vm0, %v86_v8, 0.0  ;;  %v93_v21 = vld [vmem:[#allocation8] sm:$0x1] }
  0x2d   :  { %89 = vadd.xlane.f32.xlu0 %v88_v9  ;;  %p205_p5 = pnand %p204_p4, %p198_p1 }
  0xb6   :  { %v90_v10 = vpop.xlane.xlu0 %89 }
  0xb7   :  { %v91_v11 = vadd.f32 1.0, %v90_v10 }
  0xb9   :  { %v92_v12 = vmax.f32 %v91_v11, 0.0 }
  0xbb   :  { %v95_v13 = vsel %vm94_vm1, %v92_v12, 0.0 }
  0xbc   :  { %96 = vadd.xlane.f32.xlu0 %v95_v13 }
 0x145   :  { %v97_v14 = vpop.xlane.xlu0 %96 }
 0x146   :  { %v98_v15 = vrot.slane %v97_v14, 4 }
 0x148   :  { %v99_v16 = vadd.f32 %v98_v15, %v97_v14 }
 0x14a   :  { %v100_v17 = vrot.slane %v99_v16, 2 }
 0x14c   :  { %v101_v18 = vadd.f32 %v100_v17, %v99_v16 }
 0x14e   :  { %v102_v19 = vrot.slane %v101_v18, 1 }
 0x150   :  { %v103_v20 = vadd.f32 %v102_v19, %v101_v18 }
 0x152   :  { %130 = vpush %v103_v20 }
 0x183   :  { %s131_s26 = spop %130 }
 0x184   :  { %v105_v22 = vstv %s131_s26 }
 0x185   :  { %v106_v23 = vadd.f32 %v105_v22, %v93_v21 }
 0x187   :  { %107 = vst [vmem:[#allocation8] sm:$0x1] %v106_v23 }
 0x188   :  { %208 = shalt.err (!%p205_p5)
}
 0x189   :  { %117 = dma.vmem_to_hbm [thread:$0]  %s115_s2, 16, %s263_s3, [#allocation4]  }
 0x18a   :  { %221 = dma.done.wait [#allocation4], 16  }
 0x18b   :  { %222 = vsyncadd [#allocation4], 4294967280 }
 0x18c   :  { %121 = vsyncpa [#allocation3], 1 }
 0x18d   :  { %122 = vsyncpa [#allocation6], 1 }
 0x18e   :  { %123 = vsyncpa [#allocation4], 1 }

</bundles_post_ra>
